<compile_context>
chip_gen: v5e
topology: v5e:2x2
jax: 0.10.0
libtpu: 0.0.40
codegen_flags: <defaults>
</compile_context>

<pallas_src>
import jax
import jax.numpy as jnp
from jax.experimental import pallas as pl
from jax.experimental.pallas import tpu as pltpu


# ----------------------------- helpers -------------------------------------
def _round_up(x, m):
    return ((x + m - 1) // m) * m


def _pad2(x, rows, cols):
    pr, pc = rows - x.shape[0], cols - x.shape[1]
    if pr or pc:
        x = jnp.pad(x, ((0, pr), (0, pc)))
    return x


def _pick_tiles(B, F):
    # M-tile: multiple of 16 (bf16 sublane packing); N/K-tiles: multiples of 128 (lanes).
    # Caps chosen so 2x(A_tile + W_tile) + f32 acc stays well under v7x scoped VMEM.
    tm = 256 if B >= 256 else _round_up(max(B, 1), 16)
    tn = 512 if F >= 512 else _round_up(max(F, 1), 128)
    tk = 512 if F >= 512 else _round_up(max(F, 1), 128)
    return tm, tn, tk


# ----------------------------- forward kernel ------------------------------
def _matmul_kernel(a_ref, b_ref, o_ref, acc_ref):
    # a: (tm, tk) bf16, b: (tk, tn) bf16 (weight already transposed), acc f32.
    @pl.when(pl.program_id(2) == 0)
    def _():
        acc_ref[...] = jnp.zeros_like(acc_ref)

    acc_ref[...] += jnp.dot(a_ref[...], b_ref[...],
                            preferred_element_type=jnp.float32)

    @pl.when(pl.program_id(2) == pl.num_programs(2) - 1)
    def _():
        o_ref[...] = acc_ref[...].astype(o_ref.dtype)


def geneomap_forward(eta, weight):
    """eta: (B, F) f32, weight: (F, F) f32 (torch Linear layout) -> (B, F) f32 == eta @ W.T"""
    B, F = eta.shape
    tm, tn, tk = _pick_tiles(B, F)
    Mp, Kp, Np = _round_up(B, tm), _round_up(F, tk), _round_up(F, tn)

    # Transpose once in the wrapper; kernel consumes the native (K, N) layout.
    a = _pad2(eta, Mp, Kp).astype(jnp.bfloat16)
    b = _pad2(weight.T, Kp, Np).astype(jnp.bfloat16)

    out = pl.pallas_call(
        _matmul_kernel,
        out_shape=jax.ShapeDtypeStruct((Mp, Np), jnp.float32),
        grid_spec=pltpu.PrefetchScalarGridSpec(
            num_scalar_prefetch=0,
            grid=(Mp // tm, Np // tn, Kp // tk),
            in_specs=[
                pl.BlockSpec((tm, tk), lambda i, j, k: (i, k)),
                pl.BlockSpec((tk, tn), lambda i, j, k: (k, j)),
            ],
            out_specs=pl.BlockSpec((tm, tn), lambda i, j, k: (i, j)),
            scratch_shapes=[pltpu.VMEM((tm, tn), jnp.float32)],
        ),
        compiler_params=pltpu.CompilerParams(
            dimension_semantics=("parallel", "parallel", "arbitrary")
        ),
    )(a, b)
    return out[:B, :F]


# ------------------------------ score kernel -------------------------------
def _score_kernel(d_ref, b_ref, o_ref, acc_ref, mx_ref):
    # d: (tm, tk) bf16 = (x1 - x2) tile; b: (tk, tn) bf16 = W.T tile.
    # acc: (tm, tn) f32 partial matmul; mx: (tm, 1) f32 running row-max of |A*(x1-x2)|.
    n_i = pl.program_id(1)
    k_i = pl.program_id(2)
    last_n = pl.num_programs(1) - 1
    last_k = pl.num_programs(2) - 1

    @pl.when(jnp.logical_and(n_i == 0, k_i == 0))
    def _():
        # |.| >= 0, so 0 is a valid identity for the running max.
        mx_ref[...] = jnp.zeros_like(mx_ref)

    @pl.when(k_i == 0)
    def _():
        acc_ref[...] = jnp.zeros_like(acc_ref)

    acc_ref[...] += jnp.dot(d_ref[...], b_ref[...],
                            preferred_element_type=jnp.float32)

    @pl.when(k_i == last_k)
    def _():
        tile_max = jnp.max(jnp.abs(acc_ref[...]), axis=1, keepdims=True)  # (tm, 1)
        mx_ref[...] = jnp.maximum(mx_ref[...], tile_max)

    @pl.when(jnp.logical_and(n_i == last_n, k_i == last_k))
    def _():
        # Lane-dense unmasked store: broadcast the (tm,1) max across 128 lanes.
        o_ref[...] = jnp.broadcast_to(mx_ref[...], o_ref.shape).astype(o_ref.dtype)


def geneomap_score(x1, x2, weight):
    """x1, x2: (B, F) f32 -> (B, 1) f32 similarity scores: |W@(x1-x2)^T| row-max."""
    B, F = x1.shape
    tm, tn, tk = _pick_tiles(B, F)
    Mp, Kp, Np = _round_up(B, tm), _round_up(F, tk), _round_up(F, tn)

    # Linearity of the bias-free layer: A*x1 - A*x2 == A*(x1 - x2).
    # Subtract in f32 (better numerics) before the bf16 cast; halves A-stream DMA
    # and removes one of the two matmuls.
    diff = _pad2(x1 - x2, Mp, Kp).astype(jnp.bfloat16)
    b = _pad2(weight.T, Kp, Np).astype(jnp.bfloat16)

    out = pl.pallas_call(
        _score_kernel,
        out_shape=jax.ShapeDtypeStruct((Mp, 128), jnp.float32),
        grid_spec=pltpu.PrefetchScalarGridSpec(
            num_scalar_prefetch=0,
            grid=(Mp // tm, Np // tn, Kp // tk),
            in_specs=[
                pl.BlockSpec((tm, tk), lambda i, j, k: (i, k)),
                pl.BlockSpec((tk, tn), lambda i, j, k: (k, j)),
            ],
            out_specs=pl.BlockSpec((tm, 128), lambda i, j, k: (i, 0)),
            scratch_shapes=[
                pltpu.VMEM((tm, tn), jnp.float32),  # matmul accumulator
                pltpu.VMEM((tm, 1), jnp.float32),   # running row-max
            ],
        ),
        compiler_params=pltpu.CompilerParams(
            dimension_semantics=("parallel", "arbitrary", "arbitrary")
        ),
    )(diff, b)
    return out[:B, :1]


# --------------------------------- main -------------------------------------
if __name__ == "__main__":
    key = jax.random.PRNGKey(0)
    B, F = 8, 32  # batch of eta vectors, feature dim F (= f1_train.shape[1])

    k_w, k_x1, k_x2 = jax.random.split(key, 3)

    # Deterministic init matching torch.nn.Linear(F, F, bias=False):
    # weight ~ U(-1/sqrt(F), 1/sqrt(F)), shape (out_features, in_features)
    bound = 1.0 / jnp.sqrt(jnp.float32(F))
    weight = jax.random.uniform(k_w, (F, F), jnp.float32, -bound, bound)

    eta1 = jax.random.normal(k_x1, (B, F), jnp.float32)
    eta2 = jax.random.normal(k_x2, (B, F), jnp.float32)

    # forward: A * eta
    emb = jax.block_until_ready(geneomap_forward(eta1, weight))
    # score: |A*eta1 - A*eta2|.amax(axis=1).reshape(B, 1)
    sc = jax.block_until_ready(geneomap_score(eta1, eta2, weight))

    # ---- references ----
    wT = weight.T
    emb_f32 = eta1 @ wT
    sc_f32 = jnp.max(jnp.abs(eta1 @ wT - eta2 @ wT), axis=1, keepdims=True)

    # bf16-operand references (same math as the kernels: bf16 operands, f32 accumulate)
    bf = jnp.bfloat16
    w_b = wT.astype(bf).astype(jnp.float32)
    emb_bf = jnp.dot(eta1.astype(bf).astype(jnp.float32), w_b)
    d_bf = (eta1 - eta2).astype(bf).astype(jnp.float32)
    sc_bf = jnp.max(jnp.abs(jnp.dot(d_bf, w_b)), axis=1, keepdims=True)

    assert emb.shape == (B, F) and sc.shape == (B, 1)
    # tight check vs. the bf16-operand reference (identical math)
    assert jnp.allclose(emb, emb_bf, atol=2e-3, rtol=2e-3)
    assert jnp.allclose(sc, sc_bf, atol=2e-3, rtol=2e-3)
    # semantic check vs. the full-f32 PyTorch-equivalent reference (bf16 tolerance)
    assert jnp.allclose(emb, emb_f32, atol=6e-2, rtol=6e-2)
    assert jnp.allclose(sc, sc_f32, atol=6e-2, rtol=6e-2)

    print("KERNEL_OK")
</pallas_src>

<mosaic_0001>
module attributes {stable_mosaic.version = 11 : i64} {
  func.func @_matmul_kernel(%arg0: i32, %arg1: i32, %arg2: i32, %arg3: memref<16x128xbf16, #tpu.memory_space<vmem>>, %arg4: memref<128x128xbf16, #tpu.memory_space<vmem>>, %arg5: memref<16x128xf32, #tpu.memory_space<vmem>>, %arg6: memref<16x128xf32, #tpu.memory_space<vmem>>) attributes {dimension_semantics = [#tpu.dimension_semantics<parallel>, #tpu.dimension_semantics<parallel>, #tpu.dimension_semantics<arbitrary>], iteration_bounds = array<i64: 1, 1, 1>, scalar_prefetch = 0 : i64, scratch_operands = 1 : i64, tpu.core_type = #tpu.core_type<tc>, window_params = [{transform_indices = @transform_0, window_bounds = array<i64: 16, 128>}, {transform_indices = @transform_1, window_bounds = array<i64: 128, 128>}, {transform_indices = @transform_2, window_bounds = array<i64: 16, 128>}]} {
    %c0_i32 = arith.constant 0 : i32
    %0 = arith.cmpi eq, %arg2, %c0_i32 : i32
    %1 = arith.extui %0 : i1 to i32
    %c0_i32_0 = arith.constant 0 : i32
    %2 = arith.cmpi ne, %1, %c0_i32_0 : i32
    scf.if %2 {
      %cst_10 = arith.constant 0.000000e+00 : f32
      %12 = vector.broadcast %cst_10 : f32 to vector<16x128xf32>
      %c0_11 = arith.constant 0 : index
      %c0_12 = arith.constant 0 : index
      %13 = vector.load %arg6[%c0_11, %c0_12] : memref<16x128xf32, #tpu.memory_space<vmem>>, vector<16x128xf32>
      tpu.vector_store %arg6[%c0_11, %c0_12], %12 {strides = array<i32>} : memref<16x128xf32, #tpu.memory_space<vmem>>, vector<16x128xf32>,
    } else {
    }
    %c0 = arith.constant 0 : index
    %c0_1 = arith.constant 0 : index
    %3 = vector.load %arg6[%c0, %c0_1] : memref<16x128xf32, #tpu.memory_space<vmem>>, vector<16x128xf32>
    %c0_2 = arith.constant 0 : index
    %c0_3 = arith.constant 0 : index
    %4 = vector.load %arg3[%c0_2, %c0_3] : memref<16x128xbf16, #tpu.memory_space<vmem>>, vector<16x128xbf16>
    %c0_4 = arith.constant 0 : index
    %c0_5 = arith.constant 0 : index
    %5 = vector.load %arg4[%c0_4, %c0_5] : memref<128x128xbf16, #tpu.memory_space<vmem>>, vector<128x128xbf16>
    %cst = arith.constant dense<0.000000e+00> : vector<16x128xf32>
    %6 = tpu.matmul %4, %5, %cst {dimension_numbers = #tpu.dot_dimension_numbers<[1], [0], [0], [1], [0, 0, 1, 1], [], []>} : vector<16x128xbf16>, vector<128x128xbf16>, vector<16x128xf32> -> vector<16x128xf32>
    %7 = arith.addf %3, %6 : vector<16x128xf32>
    %c0_6 = arith.constant 0 : index
    %c0_7 = arith.constant 0 : index
    %8 = vector.load %arg6[%c0_6, %c0_7] : memref<16x128xf32, #tpu.memory_space<vmem>>, vector<16x128xf32>
    tpu.vector_store %arg6[%c0_6, %c0_7], %7 {strides = array<i32>} : memref<16x128xf32, #tpu.memory_space<vmem>>, vector<16x128xf32>,
    %c0_i32_8 = arith.constant 0 : i32
    %9 = arith.cmpi eq, %arg2, %c0_i32_8 : i32
    %10 = arith.extui %9 : i1 to i32
    %c0_i32_9 = arith.constant 0 : i32
    %11 = arith.cmpi ne, %10, %c0_i32_9 : i32
    scf.if %11 {
      %c0_10 = arith.constant 0 : index
      %c0_11 = arith.constant 0 : index
      %12 = vector.load %arg6[%c0_10, %c0_11] : memref<16x128xf32, #tpu.memory_space<vmem>>, vector<16x128xf32>
      %c0_12 = arith.constant 0 : index
      %c0_13 = arith.constant 0 : index
      %13 = vector.load %arg5[%c0_12, %c0_13] : memref<16x128xf32, #tpu.memory_space<vmem>>, vector<16x128xf32>
      tpu.vector_store %arg5[%c0_12, %c0_13], %12 {strides = array<i32>} : memref<16x128xf32, #tpu.memory_space<vmem>>, vector<16x128xf32>,
    } else {
    }
    return
  }
  func.func @transform_0(%arg0: i32, %arg1: i32, %arg2: i32) -> (i32, i32) {
    %c0_i32 = arith.constant 0 : i32
    return %arg0, %arg2 : i32, i32
  }
  func.func @transform_1(%arg0: i32, %arg1: i32, %arg2: i32) -> (i32, i32) {
    %c0_i32 = arith.constant 0 : i32
    return %arg2, %arg1 : i32, i32
  }
  func.func @transform_2(%arg0: i32, %arg1: i32, %arg2: i32) -> (i32, i32) {
    %c0_i32 = arith.constant 0 : i32
    return %arg0, %arg1 : i32, i32
  }
}

</mosaic_0001>

<bundles_post_ra>
// kernel: tpu_custom_call.1
= control target key start
LH: loop header
LB: loop body
LE: loop exit
PB: predicated region body
PF: predicated region fallthrough
CT: control target
= control target key end

     0   :  { %7 = vsyncpa [#allocation4], 0  ;;  %s330_s0 = inlined_call_operand.hbm [shape: bf16[16,128], index: 0, kind: input, shape index: {}]   ;;  %s331_s1 = inlined_call_operand.hbm [shape: bf16[128,128], index: 1, kind: input, shape index: {}]   ;;  %s332_s2 = inlined_call_operand.hbm [shape: f32[16,128], index: 2, kind: output, shape index: {}]  }
   0x1   :  { %8 = vsyncpa [#allocation7], 0 }
   0x2   :  { %9 = vsyncpa [#allocation5], 0  ;;  %s14_s11 = sshll.u32 %s330_s0, 4  ;;  %s299_s12 = smov [#allocation3]   ;;  %s15_s11 = int_to_ptr.hbm [resolvable:$true] %s14_s11 }
   0x3   :  { %s16_s13 = sshll.u32 %s299_s12, 4  ;;  %s27_s16 = sshll.u32 %s331_s1, 4  ;;  %s17_s13 = int_to_ptr.vmem [resolvable:$true] %s16_s13  ;;  %s28_s16 = int_to_ptr.hbm [resolvable:$true] %s27_s16 }
   0x4   :  { %s300_s17 = smov 64   ;;  %s301_s18 = smov 4  }
   0x5   :  { %22 = dma.hbm_to_vmem [thread:$0]  %s15_s11, 128, %s17_s13, [#allocation4], %s300_s17, %s300_s17, %s301_s18  }
   0x6   :  { %s302_s19 = smov [#allocation6]  }
   0x7   :  { %s29_s20 = sshll.u32 %s302_s19, 4  ;;  %s30_s20 = int_to_ptr.vmem [resolvable:$true] %s29_s20 }
   0x8   :  { %35 = dma.hbm_to_vmem [thread:$0]  %s28_s16, 1024, %s30_s20, [#allocation7], %s300_s17, %s300_s17, %s301_s18  }
   0x9   :  { %293 = dma.done.wait [#allocation4], 128  }
   0xa   :  { %294 = vsyncadd [#allocation4], 4294967168 }
   0xb   :  { %295 = dma.done.wait [#allocation7], 1024  }
   0xc   :  { %296 = vsyncadd [#allocation7], 4294966272  ;;  %v213_v0 = vld [vmem:[#allocation6 + $0x38] sm:$0xff]  ;;  %v212_v1 = vld [vmem:[#allocation6 + $0x30] sm:$0xff]  ;;  %s303_s0 = smov [#allocation8]   ;;  %s155_s23 = sshll.u32 %s332_s2, 4  ;;  %s156_s23 = int_to_ptr.hbm [resolvable:$true] %s155_s23 }
   0xd   :  { %124 = vmatpush.bf16.msra.mxu0 %v213_v0  ;;  %v211_v2 = vld [vmem:[#allocation6 + $0x28] sm:$0xff]  ;;  %v210_v3 = vld [vmem:[#allocation6 + $0x20] sm:$0xff]  ;;  %v209_v4 = vld [vmem:[#allocation6 + $0x18] sm:$0xff]  ;;  %s153_s1 = sshll.u32 %s303_s0, 4  ;;  %s304_s24 = smov 128   ;;  %s154_s1 = int_to_ptr.vmem [resolvable:$true] %s153_s1 }
   0xe   :  { %v208_v5 = vld [vmem:[#allocation6 + $0x10] sm:$0xff]  ;;  %v207_v6 = vld [vmem:[#allocation6 + $0x8] sm:$0xff]  ;;  %v206_v7 = vld [vmem:[#allocation6] sm:$0xff]  ;;  %s305_s25 = smov 8  }
   0xf   :  { %v205_v8 = vld [vmem:[#allocation3] sm:$0xff] }
  0x11   :  { %125 = vmatpush.bf16.msra.mxu0 %v212_v1 }
  0x15   :  { %126 = vmatpush.bf16.msra.mxu0 %v211_v2 }
  0x19   :  { %127 = vmatpush.bf16.msra.mxu0 %v210_v3 }
  0x1d   :  { %128 = vmatpush.bf16.msra.mxu0 %v209_v4 }
  0x21   :  { %129 = vmatpush.bf16.msra.mxu0 %v208_v5 }
  0x25   :  { %130 = vmatpush.bf16.msra.mxu0 %v207_v6 }
  0x29   :  { %131 = vmatpush.bf16.msra.mxu0 %v206_v7 }
  0x2c   :  { %132 = vmatmul.bf16.vlgmr.msra.gmra.mxu0 %v205_v8 }
  0xa9   :  { %v133_v9 = vpop.f32.mrf.mxu0 }
  0xaa   :  { %147 = vst [vmem:[#allocation8] sm:$0xff] %v133_v9 }
  0xb1   :  { %v135_v10 = vpop.f32.mrf.mxu0 }
  0xb2   :  { %148 = vst [vmem:[#allocation8 + $0x8] sm:$0xff] %v135_v10 }
  0xb3   :  { %161 = dma.vmem_to_hbm [thread:$0]  %s154_s1, 256, %s156_s23, [#allocation5], %s304_s24, %s304_s24, %s305_s25  }
  0xb4   :  { %297 = dma.done.wait [#allocation5], 256  }
  0xb5   :  { %298 = vsyncadd [#allocation5], 4294967040 }
  0xb6   :  { %166 = vsyncpa [#allocation4], 1 }
  0xb7   :  { %167 = vsyncpa [#allocation7], 1 }
  0xb8   :  { %168 = vsyncpa [#allocation5], 1 }

</bundles_post_ra>
